<compile_context>
chip_gen: v5e
topology: v5e:2x2
jax: 0.10.0
libtpu: 0.0.40
codegen_flags: <defaults>
</compile_context>

<pallas_src>
import math

import jax
import jax.numpy as jnp
from jax.experimental import pallas as pl
from jax.experimental.pallas import tpu as pltpu


def make_pe_table(d_model, max_len=5000, dtype=jnp.float32):
    """Equivalent of the buffer built in PositionalEncoding.__init__ (2-D view).

    PyTorch stores (max_len, 1, d_model) and squeezes dim 1 in forward; the
    2-D (max_len, d_model) table is the same thing post-squeeze.  Handles odd
    d_model (the cos branch uses floor(d/2) frequencies).
    """
    position = jnp.arange(max_len, dtype=jnp.float32)[:, None]                 # (max_len, 1)
    div_term = jnp.exp(
        jnp.arange(0, d_model, 2, dtype=jnp.float32) * (-math.log(10000.0) / d_model)
    )                                                                          # (ceil(d/2),)
    pe = jnp.zeros((max_len, d_model), dtype=jnp.float32)
    pe = pe.at[:, 0::2].set(jnp.sin(position * div_term))
    pe = pe.at[:, 1::2].set(jnp.cos(position * div_term[: d_model // 2]))
    return pe.astype(dtype)


def _pe_add_2d_kernel(x_ref, pe_ref, o_ref):
    """x_ref: (tb, tc), pe_ref: (1, tc), o_ref: (tb, tc).

    Lane-dense broadcast add; one unmasked full-tile store.
    """
    o_ref[...] = x_ref[...] + pe_ref[...]


def _pe_add_3d_kernel(x_ref, pe_ref, o_ref):
    """x_ref: (tb, tl, D), pe_ref: (tl, D), o_ref: (tb, tl, D)."""
    o_ref[...] = x_ref[...] + pe_ref[...][None, :, :]


def positional_encoding(x, pe):
    """Forward pass: x (B, L, D) + pe[:L] (broadcast over batch)."""
    B, L, D = x.shape
    if L > pe.shape[0]:
        raise ValueError(f"sequence length {L} exceeds positional table max_len {pe.shape[0]}")

    # forward's  self.pe[:x.size(1), :].squeeze(1)  -> static slice in the wrapper.
    pe_l = jax.lax.slice(pe, (0, 0), (L, D)).astype(x.dtype)                   # (L, D)

    itemsize = jnp.dtype(x.dtype).itemsize
    sub = max(8, 32 // itemsize)            # sublane packing granularity (8 f32, 16 bf16, 32 i8)

    # Generation-aware VMEM sizing (v5e/v6e: 128 MiB per TC, v7x: 64 MiB per TC).
    try:
        vmem_cap = int(pltpu.get_tpu_info().vmem_capacity_bytes)
    except Exception:
        vmem_cap = 64 * 1024 * 1024         # conservative (v7x-sized) fallback
    budget = vmem_cap // 2                  # target for the double-buffered step footprint
    vmem_limit = min(int(vmem_cap * 0.75), 100 * 1024 * 1024)

    C = L * D

    def _fp2(tb, tc):
        # x-in + out (double-buffered) plus the (1, tc) pe tile (double-buffered), using tb not B.
        return 2 * (2 * tb * tc + tc) * itemsize

    compiler_params = pltpu.CompilerParams(
        dimension_semantics=("parallel", "parallel"),
        vmem_limit_bytes=vmem_limit,
    )

    # ---------------- Path A: lane-dense 2-D layout (B, L*D) -----------------
    use_2d = False
    tb = B
    tc = C
    if C % 128 == 0:
        use_2d = True
        while tc > 128 and _fp2(tb, tc) > budget:
            tc = max(128, ((tc // 2) + 127) // 128 * 128)
        while tb > sub and _fp2(tb, tc) > budget:
            tb = max(sub, ((tb // 2) + sub - 1) // sub * sub)
    elif _fp2(min(B, sub), C) <= budget:
        # C not 128-aligned, but a full-row tile fits: still far more lane-dense than D alone.
        use_2d = True
        tc = C
        while tb > sub and _fp2(tb, tc) > budget:
            tb = max(sub, ((tb // 2) + sub - 1) // sub * sub)

    if use_2d:
        # Expose >=2 parallel grid steps for large inputs so both v7x TensorCores get work
        # (neutral on single-TC v5e/v6e; small problems stay a single grid step).
        if pl.cdiv(B, tb) * pl.cdiv(C, tc) == 1 and B * C * itemsize >= 4 * 1024 * 1024:
            if C % 256 == 0:
                tc = C // 2
            elif B >= 2 * sub:
                tb = ((B // 2) + sub - 1) // sub * sub

        x2 = x.reshape(B, C)
        pe2 = pe_l.reshape(1, C)
        out2 = pl.pallas_call(
            _pe_add_2d_kernel,
            out_shape=jax.ShapeDtypeStruct((B, C), x.dtype),
            # column axis outer, batch axis inner -> pe block index constant across
            # consecutive steps, so its HBM re-DMA is elided.
            grid=(pl.cdiv(C, tc), pl.cdiv(B, tb)),
            in_specs=[
                pl.BlockSpec((tb, tc), lambda c, b: (b, c)),      # x
                pl.BlockSpec((1, tc), lambda c, b: (0, c)),       # pe (batch-invariant)
            ],
            out_specs=pl.BlockSpec((tb, tc), lambda c, b: (b, c)),
            compiler_params=compiler_params,
        )(x2, pe2)
        return out2.reshape(B, L, D)

    # ---------------- Path B: fallback 3-D layout (tb, tl, D) ----------------
    # Used when L*D is not 128-aligned AND a full-row tile does not fit VMEM.
    def _fp3(tb_, tl_):
        return 2 * (2 * tb_ * tl_ * D + tl_ * D) * itemsize

    tb, tl = B, L
    while tl > sub and _fp3(tb, tl) > budget:
        tl = max(sub, ((tl // 2) + sub - 1) // sub * sub)
    while tb > 1 and _fp3(tb, tl) > budget:
        tb = max(1, tb // 2)

    # TODO(synk): pe could also be generated in-kernel (broadcasted_iota + sin/cos on the
    # idle EUP) to drop its HBM read entirely; kept as a buffer input to mirror
    # register_buffer semantics.
    return pl.pallas_call(
        _pe_add_3d_kernel,
        out_shape=jax.ShapeDtypeStruct((B, L, D), x.dtype),
        grid=(pl.cdiv(L, tl), pl.cdiv(B, tb)),                     # batch innermost
        in_specs=[
            pl.BlockSpec((tb, tl, D), lambda l, b: (b, l, 0)),     # x
            pl.BlockSpec((tl, D), lambda l, b: (l, 0)),            # pe (batch-invariant)
        ],
        out_specs=pl.BlockSpec((tb, tl, D), lambda l, b: (b, l, 0)),
        compiler_params=compiler_params,
    )(x, pe_l)


def _reference(x, pe):
    """Pure-JAX reference mirroring the PyTorch forward."""
    L = x.shape[1]
    return x + pe[:L][None, :, :]


if __name__ == "__main__":
    key = jax.random.PRNGKey(0)
    B, L, D = 2, 8, 32          # batch=2, seq=8, hidden=32
    x = jax.random.normal(key, (B, L, D), dtype=jnp.float32)
    pe = make_pe_table(D, max_len=5000)

    out = jax.block_until_ready(positional_encoding(x, pe))

    ref = _reference(x, pe)
    assert out.shape == ref.shape and out.dtype == ref.dtype
    err = float(jnp.max(jnp.abs(out - ref)))
    assert err < 1e-6, err

    print("KERNEL_OK")
</pallas_src>

<mosaic_0001>
module attributes {stable_mosaic.version = 11 : i64} {
  func.func @_pe_add_2d_kernel(%arg0: i32, %arg1: i32, %arg2: memref<2x256xf32, #tpu.memory_space<vmem>>, %arg3: memref<1x256xf32, #tpu.memory_space<vmem>>, %arg4: memref<2x256xf32, #tpu.memory_space<vmem>>) attributes {dimension_semantics = [#tpu.dimension_semantics<parallel>, #tpu.dimension_semantics<parallel>], iteration_bounds = array<i64: 1, 1>, scalar_prefetch = 0 : i64, scratch_operands = 0 : i64, tpu.core_type = #tpu.core_type<tc>, window_params = [{transform_indices = @transform_0, window_bounds = array<i64: 2, 256>}, {transform_indices = @transform_1, window_bounds = array<i64: 1, 256>}, {transform_indices = @transform_2, window_bounds = array<i64: 2, 256>}]} {
    %c0 = arith.constant 0 : index
    %c0_0 = arith.constant 0 : index
    %0 = vector.load %arg2[%c0, %c0_0] : memref<2x256xf32, #tpu.memory_space<vmem>>, vector<2x256xf32>
    %c0_1 = arith.constant 0 : index
    %c0_2 = arith.constant 0 : index
    %1 = vector.load %arg3[%c0_1, %c0_2] : memref<1x256xf32, #tpu.memory_space<vmem>>, vector<1x256xf32>
    %2 = vector.broadcast %1 : vector<1x256xf32> to vector<2x256xf32>
    %3 = arith.addf %0, %2 : vector<2x256xf32>
    %c0_3 = arith.constant 0 : index
    %c0_4 = arith.constant 0 : index
    %4 = vector.load %arg4[%c0_3, %c0_4] : memref<2x256xf32, #tpu.memory_space<vmem>>, vector<2x256xf32>
    tpu.vector_store %arg4[%c0_3, %c0_4], %3 {strides = array<i32>} : memref<2x256xf32, #tpu.memory_space<vmem>>, vector<2x256xf32>,
    return
  }
  func.func @transform_0(%arg0: i32, %arg1: i32) -> (i32, i32) {
    %c0_i32 = arith.constant 0 : i32
    return %arg1, %arg0 : i32, i32
  }
  func.func @transform_1(%arg0: i32, %arg1: i32) -> (i32, i32) {
    %c0_i32 = arith.constant 0 : i32
    %c0_i32_0 = arith.constant 0 : i32
    return %c0_i32, %arg0 : i32, i32
  }
  func.func @transform_2(%arg0: i32, %arg1: i32) -> (i32, i32) {
    %c0_i32 = arith.constant 0 : i32
    return %arg1, %arg0 : i32, i32
  }
}

</mosaic_0001>

<bundles_post_ra>
// kernel: tpu_custom_call.1
= control target key start
LH: loop header
LB: loop body
LE: loop exit
PB: predicated region body
PF: predicated region fallthrough
CT: control target
= control target key end

     0   :  { %7 = vsyncpa [#allocation3], 0  ;;  %s177_s0 = inlined_call_operand.hbm [shape: f32[2,256], index: 0, kind: input, shape index: {}]   ;;  %s178_s1 = inlined_call_operand.hbm [shape: f32[1,256], index: 1, kind: input, shape index: {}]   ;;  %s179_s2 = inlined_call_operand.hbm [shape: f32[2,256], index: 2, kind: output, shape index: {}]  }
   0x1   :  { %8 = vsyncpa [#allocation6], 0 }
   0x2   :  { %9 = vsyncpa [#allocation4], 0  ;;  %s15_s11 = sshll.u32 %s177_s0, 4  ;;  %s150_s12 = smov [#allocation2]   ;;  %s16_s11 = int_to_ptr.hbm [resolvable:$true] %s15_s11 }
   0x3   :  { %s17_s13 = sshll.u32 %s150_s12, 4  ;;  %s26_s16 = sshll.u32 %s178_s1, 4  ;;  %s18_s13 = int_to_ptr.vmem [resolvable:$true] %s17_s13  ;;  %s27_s16 = int_to_ptr.hbm [resolvable:$true] %s26_s16 }
   0x4   :  { %20 = dma.hbm_to_vmem [thread:$0]  %s16_s11, 64, %s18_s13, [#allocation3]  }
   0x5   :  { %s151_s17 = smov [#allocation5]  }
   0x6   :  { %s28_s18 = sshll.u32 %s151_s17, 4  ;;  %s29_s18 = int_to_ptr.vmem [resolvable:$true] %s28_s18 }
   0x7   :  { %31 = dma.hbm_to_vmem [thread:$0]  %s27_s16, 32, %s29_s18, [#allocation6]  }
   0x8   :  { %144 = dma.done.wait [#allocation3], 64  }
   0x9   :  { %145 = vsyncadd [#allocation3], 4294967232 }
   0xa   :  { %146 = dma.done.wait [#allocation6], 32  }
   0xb   :  { %147 = vsyncadd [#allocation6], 4294967264  ;;  %v41_v0 = vld [vmem:[#allocation5] sm:$0x3]  ;;  %vm46_vm0 = vcmask 1041408   ;;  %s152_s0 = smov [#allocation7]  }
   0xc   :  { %v43_v1 = vperm.slane %v41_v0, 0  ;;  %v44_v2 = vperm.slane %v41_v0, 1  ;;  %v40_v3 = vld [vmem:[#allocation2] sm:$0xf]  ;;  %s56_s19 = sshll.u32 %s152_s0, 4  ;;  %s58_s21 = sshll.u32 %s179_s2, 4  ;;  %s57_s19 = int_to_ptr.vmem [resolvable:$true] %s56_s19  ;;  %s59_s21 = int_to_ptr.hbm [resolvable:$true] %s58_s21 }
   0xe   :  { %v45_v4 = vrot.slane %v44_v2, 6 }
  0x10   :  { %v47_v5 = vsel %vm46_vm0, %v43_v1, %v45_v4 }
  0x11   :  { %v49_v6 = vadd.f32 %v47_v5, %v40_v3 }
  0x13   :  { %50 = vst [vmem:[#allocation7] sm:$0xf] %v49_v6 }
  0x14   :  { %61 = dma.vmem_to_hbm [thread:$0]  %s57_s19, 64, %s59_s21, [#allocation4]  }
  0x15   :  { %148 = dma.done.wait [#allocation4], 64  }
  0x16   :  { %149 = vsyncadd [#allocation4], 4294967232 }
  0x17   :  { %66 = vsyncpa [#allocation3], 1 }
  0x18   :  { %67 = vsyncpa [#allocation6], 1 }
  0x19   :  { %68 = vsyncpa [#allocation4], 1 }

</bundles_post_ra>
